<compile_context>
chip_gen: v5e
topology: v5e:2x2
jax: 0.10.0
libtpu: 0.0.40
codegen_flags: <defaults>
</compile_context>

<pallas_src>
import numpy as np
import jax
import jax.numpy as jnp
from jax import lax
from jax.experimental import pallas as pl
from jax.experimental.pallas import tpu as pltpu


# ---------------------------------------------------------------------------
# Deterministic parameter construction (mirrors KasarlaCode.__init__).
# ---------------------------------------------------------------------------
def _V(order):
    if order == 1:
        return np.array([[1.0, -1.0]])
    col1 = np.zeros((order, 1))
    col1[0] = 1.0
    row1 = -1.0 / order * np.ones((1, order))
    return np.concatenate(
        (col1,
         np.concatenate((row1, np.sqrt(1.0 - 1.0 / order ** 2) * _V(order - 1)),
                        axis=0)),
        axis=1,
    )


def kasarla_codebook(num_classes):
    # prototypes: (num_classes, num_classes - 1) float32
    return _V(num_classes - 1).T.astype(np.float32)


def _round_up(x, m):
    return ((x + m - 1) // m) * m


def _physical_vmem_bytes():
    """Per-TensorCore physical VMEM; conservative fallback if query fails."""
    try:
        info = pltpu.get_tpu_info()
        v = getattr(info, "vmem_capacity_bytes", None)
        if v:
            return int(v)
    except Exception:
        pass
    return 64 << 20  # v7x per-TC size — the smallest of the listed generations


# ---------------------------------------------------------------------------
# Kernel: one grid step computes a (TB, D_pad) output tile as a one-hot MXU
# matmul against one (NC_CHUNK, D_pad) codebook chunk, accumulating over the
# (innermost, "arbitrary") class-chunk axis.
# ---------------------------------------------------------------------------
def _onehot_gather_kernel(y_ref, cb_ref, out_ref):
    k = pl.program_id(1)                       # class-chunk index (reduction axis)
    tb = out_ref.shape[0]
    nc = cb_ref.shape[0]

    labels = y_ref[...]                        # (tb, 1) int32, already in vregs
    col = lax.broadcasted_iota(jnp.int32, (tb, nc), 1) + k * nc
    one_hot = (labels == col).astype(jnp.float32)          # exact {0.0, 1.0}

    # Exact f32 gather: one_hot rows have exactly one 1.0, HIGHEST precision keeps
    # the codebook values un-rounded through the MXU passes.
    partial = jnp.dot(one_hot, cb_ref[...],
                      preferred_element_type=jnp.float32,
                      precision=jax.lax.Precision.HIGHEST)

    @pl.when(k == 0)
    def _():
        out_ref[...] = partial.astype(out_ref.dtype)

    @pl.when(k > 0)
    def _():
        # Other chunks contribute exact +0.0 for rows owned by a different chunk.
        out_ref[...] = out_ref[...] + partial.astype(out_ref.dtype)


# ---------------------------------------------------------------------------
# Wrapper.
# ---------------------------------------------------------------------------
def kasarla_forward(codebook, y, *, block_b=256, force_pallas=False):
    """out[b, :] = codebook[y[b], :]  (Pallas one-hot-matmul row gather)."""
    codebook = jnp.asarray(codebook)
    y = jnp.asarray(y, dtype=jnp.int32)
    N, D = codebook.shape
    B = y.shape[0]

    # Tiny problems: XLA's native gather beats any kernel launch overhead.
    if not force_pallas and (B * D) < (1 << 14):
        return codebook[y]

    # Clamp labels so an out-of-range y can never index past the codebook.
    # NOTE: PyTorch indexing would raise on OOB labels; here (like XLA gather)
    # OOB labels are silently clamped to the nearest valid class.
    y = jnp.clip(y, 0, N - 1)

    # --- layout / tiling ----------------------------------------------------
    # Lane-dense latent dim (multiple of 128 lanes).
    d_pad = max(128, _round_up(D, 128))

    # Sublane-dense batch tiles (multiple of 8 rows).  Keep tb modest so the
    # (tb, nc_chunk) f32 one-hot intermediate stays small, and make sure we get
    # at least 2 batch tiles when possible (v7x has 2 TensorCores).
    b_ceil8 = _round_up(B, 8)
    tb = min(_round_up(block_b, 8), b_ceil8)
    if (b_ceil8 // tb) < 2 and b_ceil8 >= 16:
        tb = max(8, _round_up(tb // 2, 8))
    b_pad = _round_up(B, tb)

    # --- generation-aware VMEM budget / class chunking ----------------------
    phys_vmem = _physical_vmem_bytes()
    vmem_cap = int(phys_vmem * 0.85)           # leave headroom for Mosaic scratch

    n_pad0 = max(128, _round_up(N, 128))       # MXU contraction dim alignment
    # Per-step footprint independent of the codebook chunk:
    #   2x output tile (double buffer) + 2x label tile + f32 partial intermediate.
    fixed = 2 * tb * d_pad * 4 + 2 * tb * 4 + tb * d_pad * 4 + (2 << 20)
    # Per padded class: 2x (double-buffered) codebook row + one one-hot column.
    per_class = 2 * d_pad * 4 + tb * 4

    budget = vmem_cap - fixed
    if budget >= per_class * n_pad0:
        nc_chunk = n_pad0                      # whole codebook resident in VMEM
    else:
        nc_chunk = max(128, (max(budget, 0) // per_class) // 128 * 128)
        # TODO(synk): if even a 128-class chunk at this (tb, d_pad) exceeds VMEM
        # (enormous latent dims), also chunk the latent dimension.
    n_pad = _round_up(N, nc_chunk)

    cb_padded = codebook
    if (n_pad, d_pad) != (N, D):
        cb_padded = jnp.pad(codebook, ((0, n_pad - N), (0, d_pad - D)))

    y_padded = y if b_pad == B else jnp.pad(y, (0, b_pad - B))
    y2d = y_padded.reshape(b_pad, 1)

    vmem_needed = fixed + per_class * nc_chunk
    vmem_limit = None if vmem_needed <= (16 << 20) else min(vmem_needed, vmem_cap)

    grid = (b_pad // tb, n_pad // nc_chunk)

    out_padded = pl.pallas_call(
        _onehot_gather_kernel,
        out_shape=jax.ShapeDtypeStruct((b_pad, d_pad), codebook.dtype),
        grid=grid,
        in_specs=[
            # Labels: tiled, constant along the class-chunk axis (no re-DMA).
            pl.BlockSpec((tb, 1), lambda i, k: (i, 0)),
            # Codebook chunk: constant along the batch axis; single chunk when it
            # fits fully resident in VMEM.
            pl.BlockSpec((nc_chunk, d_pad), lambda i, k: (k, 0)),
        ],
        out_specs=pl.BlockSpec((tb, d_pad), lambda i, k: (i, 0)),
        compiler_params=pltpu.CompilerParams(
            dimension_semantics=("parallel", "arbitrary"),
            vmem_limit_bytes=vmem_limit,
        ),
    )(y2d, cb_padded)

    return out_padded[:B, :D]


if __name__ == "__main__":
    key = jax.random.PRNGKey(0)
    k1, k2 = jax.random.split(key)

    # Case 1: small single-chunk problem (num_classes=16 -> latent_dim=15),
    # batch split into two tiles for the "parallel" axis.
    nc1 = 16
    cb1 = jnp.asarray(kasarla_codebook(nc1), dtype=jnp.float32)      # (16, 15)
    y1 = jax.random.randint(k1, (32,), 0, nc1, dtype=jnp.int32)
    out1 = jax.block_until_ready(kasarla_forward(cb1, y1, force_pallas=True))
    np.testing.assert_allclose(np.asarray(out1), np.asarray(cb1[y1]),
                               rtol=0, atol=1e-6)

    # Case 2: multi-tile grid with a ragged (padded) batch tail.
    nc2 = 12
    cb2 = jnp.asarray(kasarla_codebook(nc2), dtype=jnp.float32)      # (12, 11)
    y2 = jax.random.randint(k2, (37,), 0, nc2, dtype=jnp.int32)
    out2 = jax.block_until_ready(
        kasarla_forward(cb2, y2, block_b=16, force_pallas=True))
    np.testing.assert_allclose(np.asarray(out2), np.asarray(cb2[y2]),
                               rtol=0, atol=1e-6)

    print("KERNEL_OK")
</pallas_src>

<mosaic_0001>
module attributes {stable_mosaic.version = 11 : i64} {
  func.func @_onehot_gather_kernel(%arg0: i32, %arg1: i32, %arg2: memref<16x1xi32, #tpu.memory_space<vmem>>, %arg3: memref<128x128xf32, #tpu.memory_space<vmem>>, %arg4: memref<16x128xf32, #tpu.memory_space<vmem>>) attributes {dimension_semantics = [#tpu.dimension_semantics<parallel>, #tpu.dimension_semantics<arbitrary>], iteration_bounds = array<i64: 2, 1>, scalar_prefetch = 0 : i64, scratch_operands = 0 : i64, tpu.core_type = #tpu.core_type<tc>, window_params = [{transform_indices = @transform_0, window_bounds = array<i64: 16, 1>}, {transform_indices = @transform_1, window_bounds = array<i64: 128, 128>}, {transform_indices = @transform_2, window_bounds = array<i64: 16, 128>}]} {
    %c0 = arith.constant 0 : index
    %c0_0 = arith.constant 0 : index
    %0 = vector.load %arg2[%c0, %c0_0] : memref<16x1xi32, #tpu.memory_space<vmem>>, vector<16x1xi32>
    %1 = tpu.iota {dimensions = array<i32: 1>} : vector<16x128xi32>
    %c128_i32 = arith.constant 128 : i32
    %2 = arith.muli %arg1, %c128_i32 : i32
    %3 = vector.broadcast %2 : i32 to vector<16x128xi32>
    %4 = arith.addi %1, %3 : vector<16x128xi32>
    %5 = vector.broadcast %0 : vector<16x1xi32> to vector<16x128xi32>
    %6 = arith.cmpi eq, %5, %4 : vector<16x128xi32>
    %7 = arith.extui %6 : vector<16x128xi1> to vector<16x128xi32>
    %8 = arith.sitofp %7 : vector<16x128xi32> to vector<16x128xf32>
    %c0_1 = arith.constant 0 : index
    %c0_2 = arith.constant 0 : index
    %9 = vector.load %arg3[%c0_1, %c0_2] : memref<128x128xf32, #tpu.memory_space<vmem>>, vector<128x128xf32>
    %cst = arith.constant dense<0.000000e+00> : vector<16x128xf32>
    %10 = tpu.matmul %8, %9, %cst {dimension_numbers = #tpu.dot_dimension_numbers<[1], [0], [0], [1], [0, 0, 1, 1], [], []>, precision = #tpu.contract_precision<fp32>} : vector<16x128xf32>, vector<128x128xf32>, vector<16x128xf32> -> vector<16x128xf32>
    %c0_i32 = arith.constant 0 : i32
    %11 = arith.cmpi eq, %arg1, %c0_i32 : i32
    %12 = arith.extui %11 : i1 to i32
    %c0_i32_3 = arith.constant 0 : i32
    %13 = arith.cmpi ne, %12, %c0_i32_3 : i32
    scf.if %13 {
      %c0_6 = arith.constant 0 : index
      %c0_7 = arith.constant 0 : index
      %17 = vector.load %arg4[%c0_6, %c0_7] : memref<16x128xf32, #tpu.memory_space<vmem>>, vector<16x128xf32>
      tpu.vector_store %arg4[%c0_6, %c0_7], %10 {strides = array<i32>} : memref<16x128xf32, #tpu.memory_space<vmem>>, vector<16x128xf32>,
    } else {
    }
    %c0_i32_4 = arith.constant 0 : i32
    %14 = arith.cmpi sgt, %arg1, %c0_i32_4 : i32
    %15 = arith.extui %14 : i1 to i32
    %c0_i32_5 = arith.constant 0 : i32
    %16 = arith.cmpi ne, %15, %c0_i32_5 : i32
    scf.if %16 {
      %c0_6 = arith.constant 0 : index
      %c0_7 = arith.constant 0 : index
      %17 = vector.load %arg4[%c0_6, %c0_7] : memref<16x128xf32, #tpu.memory_space<vmem>>, vector<16x128xf32>
      %18 = arith.addf %17, %10 : vector<16x128xf32>
      %c0_8 = arith.constant 0 : index
      %c0_9 = arith.constant 0 : index
      %19 = vector.load %arg4[%c0_8, %c0_9] : memref<16x128xf32, #tpu.memory_space<vmem>>, vector<16x128xf32>
      tpu.vector_store %arg4[%c0_8, %c0_9], %18 {strides = array<i32>} : memref<16x128xf32, #tpu.memory_space<vmem>>, vector<16x128xf32>,
    } else {
    }
    return
  }
  func.func @transform_0(%arg0: i32, %arg1: i32) -> (i32, i32) {
    %c0_i32 = arith.constant 0 : i32
    %c0_i32_0 = arith.constant 0 : i32
    return %arg0, %c0_i32 : i32, i32
  }
  func.func @transform_1(%arg0: i32, %arg1: i32) -> (i32, i32) {
    %c0_i32 = arith.constant 0 : i32
    %c0_i32_0 = arith.constant 0 : i32
    return %arg1, %c0_i32 : i32, i32
  }
  func.func @transform_2(%arg0: i32, %arg1: i32) -> (i32, i32) {
    %c0_i32 = arith.constant 0 : i32
    %c0_i32_0 = arith.constant 0 : i32
    return %arg0, %c0_i32 : i32, i32
  }
}

</mosaic_0001>

<bundles_post_ra>
// kernel: tpu_custom_call.1
= control target key start
LH: loop header
LB: loop body
LE: loop exit
PB: predicated region body
PF: predicated region fallthrough
CT: control target
= control target key end

     0   :  { %7 = vsyncpa [#allocation3], 0  ;;  %s1268_s0 = inlined_call_operand.vmem [shape: s32[32,1], index: 0, kind: input, shape index: {}]   ;;  %s1269_s1 = inlined_call_operand.hbm [shape: f32[128,128], index: 1, kind: input, shape index: {}]   ;;  %s1270_s2 = inlined_call_operand.hbm [shape: f32[32,128], index: 2, kind: output, shape index: {}]  }
   0x1   :  { %8 = vsyncpa [#allocation4], 0 }
   0x2   :  { %10 = vsyncpa [#allocation4 + $0x1], 0  ;;  %s973_s9 = smov 0   ;;  %s975_s10 = smov 0  }
   0x3   :  { %s977_s11 = smov 0   ;;  %s979_s12 = smov 0  }
   0x4   :  { %s981_s13 = smov 0   ;;  %s983_s14 = smov 0  }
   0x5 LB: > { %s706_s15 = sadd.s32 4294967295, %s948_s14   ;;  %s707_s16 = sadd.s32 4294967294, %s948_s14   ;;  %s948_s14 = sphi %s983_s14, %s16_s14   ;;  %s944_s13 = sphi %s981_s13, %s1277_s13   ;;  %s940_s12 = sphi %s979_s12, %s1276_s12   ;;  %s936_s11 = sphi %s977_s11, %s1275_s11   ;;  %s932_s10 = sphi %s975_s10, %s1274_s10   ;;  %s928_s9 = sphi %s973_s9, %s1273_s9  }
   0x6   : > { %s28_s17 = sadd.s32 1, %s944_s13  ;;  %s87_s18 = sadd.s32 1, %s936_s11 }
   0x7   : > { %p30_p0 = scmp.ge.s32.totalorder %s28_s17, 2  ;;  %p97_p1 = scmp.ne.s32.totalorder %s936_s11, %s932_s10 }
   0x8   : > { %p98_p2 = scmp.eq.s32.totalorder %s706_s15, 1  ;;  %p103_p3 = scmp.ne.s32.totalorder %s932_s10, %s928_s9 }
   0x9   : > { %s1279_s17 = smov (%p30_p0, %s28_s17), 0  ;;  %p104_p5 = scmp.eq.s32.totalorder %s707_s16, 1 }
   0xa   : > { %p1013_p4 = por %p98_p2, %p97_p1  ;;  %s84_s20 = ssub.s32 %s944_s13, %s1279_s17 }
   0xb   : > { %p708_p6 = scmp.ge.s32.totalorder %s948_s14, 1  ;;  %p85_p7 = scmp.eq.s32.totalorder %s84_s20, 0 }
   0xc   : > { %p1020_p8 = por %p104_p5, %p103_p3  ;;  %p111_p9 = scmp.lt.s32.totalorder %s948_s14, 3 }
   0xd   : > { %s1026_s22 = scalar_select %p85_p7, %s936_s11, %s87_s18  }
   0xe   : > { %p112_p10 = pnand %p708_p6, %p111_p9  ;;  %p776_p11 = scmp.eq.s32.totalorder %s706_s15, 0 }
   0xf   : > { %s125_s25 = sshll.u32 %s1269_s1, 4  ;;  %s950_s26 = smov [#allocation2]   ;;  %s126_s25 = int_to_ptr.hbm [resolvable:$true] %s125_s25 }
  0x10   : > { %p768_p12 = pneg %p112_p10  ;;  %s127_s27 = sshll.u32 %s950_s26, 4  ;;  %s128_s27 = int_to_ptr.vmem [resolvable:$true] %s127_s27 }
  0x11   : > { %s951_s28 = smov 128   ;;  %s952_s29 = smov 8  }
  0x12   : > { %p769_p13 = pnand %p776_p11, %p768_p12  ;;  %152 = sbr.rel (%p112_p10) target bundleno = 307 (0x133), region = 28 }
  0x14   : > { %771 = dma.hbm_to_vmem [thread:$0]  (!%p769_p13), %s126_s25, 2048, %s128_s27, [#allocation3], %s951_s28, %s951_s28, %s952_s29  }
  0x17   : > { %919 = dma.done.wait (%p776_p11), [#allocation3], 2048  }
  0x18   : > { %921 = vsyncadd (%p776_p11), [#allocation3], 4294965248  ;;  %s714_s30 = sshll.u32 %s940_s12, 1  ;;  %v953_v0 = vmov 0   ;;  %v217_v2 = vld [vmem:[#allocation2 + $0x78] sm:$0xff]  ;;  %v216_v4 = vld [vmem:[#allocation2 + $0x70] sm:$0xff] }
  0x19   : > { %835 = vset.pattern.permute.xlu0 %v953_v0  ;;  %p176_p0 = scmp.lt.s32.totalorder %s714_s30, 3  ;;  %v1035_v3 = vand.u32 4294901760, %v217_v2  ;;  %v215_v5 = vld [vmem:[#allocation2 + $0x68] sm:$0xff]  ;;  %v214_v6 = vld [vmem:[#allocation2 + $0x60] sm:$0xff]  ;;  %v1037_v7 = vand.u32 4294901760, %v216_v4  ;;  %v213_v10 = vld [vmem:[#allocation2 + $0x58] sm:$0xff] }
  0x1a   : > { %v1039_v8 = vand.u32 4294901760, %v215_v5  ;;  %v1041_v9 = vand.u32 4294901760, %v214_v6  ;;  %v212_v11 = vld [vmem:[#allocation2 + $0x50] sm:$0xff]  ;;  %v211_v12 = vld [vmem:[#allocation2 + $0x48] sm:$0xff]  ;;  %v1045_v14 = vand.u32 4294901760, %v213_v10  ;;  %v210_v17 = vld [vmem:[#allocation2 + $0x40] sm:$0xff] }
  0x1b   : > { %s1281_s30 = smov (!%p176_p0, %s714_s30), 3  ;;  %v268_v13 = vsub.f32 %v217_v2, %v1035_v3  ;;  %432 = vmatpush.msra.mxu3 %v1035_v3  ;;  %219 = vmatpush.msra.mxu0 %v1035_v3  ;;  %v1048_v15 = vand.u32 4294901760, %v212_v11  ;;  %v1050_v16 = vand.u32 4294901760, %v211_v12  ;;  %v274_v18 = vsub.f32 %v216_v4, %v1037_v7  ;;  %v209_v35 = vld [vmem:[#allocation2 + $0x38] sm:$0xff]  ;;  %v208_v39 = vld [vmem:[#allocation2 + $0x30] sm:$0xff]  ;;  %v207_v40 = vld [vmem:[#allocation2 + $0x28] sm:$0xff] }
  0x1c   : > { %s715_s3 = sshll.u32 %s1281_s30, 3  ;;  %v280_v19 = vsub.f32 %v215_v5, %v1039_v8  ;;  %v286_v20 = vsub.f32 %v214_v6, %v1041_v9  ;;  %v1055_v21 = vand.u32 4294901760, %v210_v17  ;;  %v292_v23 = vsub.f32 %v213_v10, %v1045_v14  ;;  %v206_v43 = vld [vmem:[#allocation2 + $0x20] sm:$0xff]  ;;  %v205_v50 = vld [vmem:[#allocation2 + $0x18] sm:$0xff]  ;;  %v204_v57 = vld [vmem:[#allocation2 + $0x10] sm:$0xff]  ;;  %s172_s7 = sand.u32 1, %s932_s10  }
  0x1d   : > { %s179_s6 = scalar_lea.vmem %s1268_s0, %s715_s3  ;;  %v1057_v22 = vand.u32 4294901760, %v268_v13  ;;  %374 = vmatpush.msra.mxu2 %v268_v13  ;;  %434 = vmatpush.msra.mxu3 %v1037_v7  ;;  %v298_v24 = vsub.f32 %v212_v11, %v1048_v15  ;;  %v1062_v26 = vand.u32 4294901760, %v274_v18  ;;  %v304_v29 = vsub.f32 %v211_v12, %v1050_v16  ;;  %v203_v63 = vld [vmem:[#allocation2 + $0x8] sm:$0xff]  ;;  %v202_v6 = vld [vmem:[#allocation2] sm:$0xff]  ;;  %s713_s8 = sshll.u32 %s172_s7, 4 }
  0x1e   : > { %v183_v1 = vld [vmem:[%s179_s6] sm:$0xff]  ;;  %v184_v25 = vld [vmem:[%s179_s6 + $0x8] sm:$0xff]  ;;  %v1064_v27 = vand.u32 4294901760, %v280_v19  ;;  %v1066_v28 = vand.u32 4294901760, %v286_v20  ;;  %221 = vmatpush.msra.mxu0 %v1037_v7  ;;  %v1071_v31 = vand.u32 4294901760, %v292_v23  ;;  %v310_v34 = vsub.f32 %v210_v17, %v1055_v21  ;;  %s729_s15 = sshll.u32 %s940_s12, 4 }
  0x1f   : > { %191 = vperm.xlu0 %835, %v183_v1   ;;  %v270_v30 = vsub.f32 %v268_v13, %v1057_v22  ;;  %377 = vmatpush.msra.mxu2 %v274_v18  ;;  %v276_v32 = vsub.f32 %v274_v18, %v1062_v26  ;;  %v1079_v38 = vand.u32 4294901760, %v298_v24  ;;  %v1082_v42 = vand.u32 4294901760, %v304_v29  ;;  %s618_s20 = scalar_lea.hbm %s1270_s2, %s729_s15  ;;  %s174_s23 = scalar_lea.vmem [#allocation5], %s713_s8 }
  0x20   : > { %436 = vmatpush.msra.mxu3 %v1039_v8  ;;  %v282_v33 = vsub.f32 %v280_v19, %v1064_v27  ;;  %223 = vmatpush.msra.mxu0 %v1039_v8  ;;  %v288_v37 = vsub.f32 %v286_v20, %v1066_v28  ;;  %v294_v45 = vsub.f32 %v292_v23, %v1071_v31  ;;  %v1086_v46 = vand.u32 4294901760, %v209_v35  ;;  %s619_s24 = sshll.u32 %s174_s23, 4  ;;  %s621_s25 = sshll.u32 %s618_s20, 4  ;;  %s620_s24 = int_to_ptr.vmem [resolvable:$true] %s619_s24  ;;  %s622_s25 = int_to_ptr.hbm [resolvable:$true] %s621_s25 }
  0x21   : > { %v271_v36 = vand.u32 4294901760, %v270_v30  ;;  %380 = vmatpush.msra.mxu2 %v280_v19  ;;  %v277_v41 = vand.u32 4294901760, %v276_v32  ;;  %v1089_v47 = vand.u32 4294901760, %v310_v34  ;;  %v1092_v48 = vand.u32 4294901760, %v208_v39  ;;  %s607_s12 = scalar_lea.sflag [#allocation4], %s172_s7  ;;  %s880_s26 = sshra.s32 %s622_s25, 4  ;;  %s881_s26 = int_to_ptr.hbm [resolvable:$true] %s880_s26 }
  0x22   : > { %438 = vmatpush.msra.mxu3 %v1041_v9  ;;  %225 = vmatpush.msra.mxu0 %v1041_v9  ;;  %v283_v44 = vand.u32 4294901760, %v282_v33  ;;  %v1094_v49 = vand.u32 4294901760, %v207_v40  ;;  %v289_v51 = vand.u32 4294901760, %v288_v37  ;;  %v300_v52 = vsub.f32 %v298_v24, %v1079_v38  ;;  %s882_s27 = scalar_lea.hbm %s881_s26, 16  ;;  %s886_s30 = scalar_lea.hbm %s1270_s2, 32 }
  0x23   : > { %272 = vmatpush.msra.mxu1 %v271_v36  ;;  %383 = vmatpush.msra.mxu2 %v286_v20  ;;  %v316_v53 = vsub.f32 %v209_v35, %v1086_v46  ;;  %v1098_v54 = vand.u32 4294901760, %v206_v43  ;;  %v306_v55 = vsub.f32 %v304_v29, %v1082_v42  ;;  %v322_v56 = vsub.f32 %v208_v39, %v1092_v48  ;;  %p883_p1 = scmp.ne.s32.totalorder %s881_s26, %s882_s27  ;;  %p887_p5 = scmp.lt.s32.totalorder %s881_s26, %s1270_s2 }
  0x24   : > { %440 = vmatpush.msra.mxu3 %v1045_v14  ;;  %227 = vmatpush.msra.mxu0 %v1045_v14  ;;  %v295_v58 = vand.u32 4294901760, %v294_v45  ;;  %v328_v60 = vsub.f32 %v207_v40, %v1094_v49  ;;  %v1107_v61 = vand.u32 4294901760, %v205_v50  ;;  %v312_v62 = vsub.f32 %v310_v34, %v1089_v47  ;;  %p888_p6 = scmp.lt.s32.totalorder %s886_s30, %s882_s27 }
  0x25   : > { %278 = vmatpush.msra.mxu1 %v277_v41  ;;  %386 = vmatpush.msra.mxu2 %v292_v23  ;;  %v1104_v59 = vand.u32 4294901760, %v316_v53  ;;  %v301_v0 = vand.u32 4294901760, %v300_v52  ;;  %v1112_v1 = vand.u32 4294901760, %v322_v56  ;;  %v334_v2 = vsub.f32 %v206_v43, %v1098_v54  ;;  %p884_p2 = pnand %p883_p1, %p1013_p4 }
  0x26   : > { %442 = vmatpush.msra.mxu3 %v1048_v15  ;;  %229 = vmatpush.msra.mxu0 %v1048_v15  ;;  %v1115_v4 = vand.u32 4294901760, %v204_v57  ;;  %v307_v5 = vand.u32 4294901760, %v306_v55  ;;  %v1120_v11 = vand.u32 4294901760, %v328_v60  ;;  %v340_v12 = vsub.f32 %v205_v50, %v1107_v61  ;;  %p889_p7 = por %p888_p6, %p887_p5 }
  0x27   : > { %194 = vperm.xlu0 %835, %v184_v25   ;;  %284 = vmatpush.msra.mxu1 %v283_v44  ;;  %v318_v10 = vsub.f32 %v316_v53, %v1104_v59  ;;  %v1123_v13 = vand.u32 4294901760, %v203_v63  ;;  %v313_v17 = vand.u32 4294901760, %v312_v62  ;;  %v324_v18 = vsub.f32 %v322_v56, %v1112_v1  ;;  %p885_p3 = pneg %p884_p2 }
  0x28   : > { %389 = vmatpush.msra.mxu2 %v298_v24  ;;  %444 = vmatpush.msra.mxu3 %v1050_v16  ;;  %v1128_v19 = vand.u32 4294901760, %v334_v2  ;;  %v346_v20 = vsub.f32 %v204_v57, %v1115_v4  ;;  %v1131_v23 = vand.u32 4294901760, %v202_v6  ;;  %v330_v25 = vsub.f32 %v328_v60, %v1120_v11 }
  0x29   : > { %231 = vmatpush.msra.mxu0 %v1050_v16  ;;  %290 = vmatpush.msra.mxu1 %v289_v51  ;;  %v319_v24 = vand.u32 4294901760, %v318_v10  ;;  %v352_v30 = vsub.f32 %v203_v63, %v1123_v13  ;;  %v325_v32 = vand.u32 4294901760, %v324_v18  ;;  %p890_p9 = pnand %p889_p7, %p885_p3 }
  0x2a   : > { %392 = vmatpush.msra.mxu2 %v304_v29  ;;  %446 = vmatpush.msra.mxu3 %v1055_v21  ;;  %v1136_v29 = vand.u32 4294901760, %v340_v12  ;;  %v336_v33 = vsub.f32 %v334_v2, %v1128_v19  ;;  %v358_v35 = vsub.f32 %v202_v6, %v1131_v23  ;;  %v331_v36 = vand.u32 4294901760, %v330_v25 }
  0x2b   : > { %233 = vmatpush.msra.mxu0 %v1055_v21  ;;  %296 = vmatpush.msra.mxu1 %v295_v58  ;;  %v1148_v39 = vand.u32 4294901760, %v352_v30 }
  0x2c   : > { %395 = vmatpush.msra.mxu2 %v310_v34  ;;  %448 = vmatpush.msra.mxu3 %v1086_v46  ;;  %v1142_v34 = vand.u32 4294901760, %v346_v20  ;;  %v342_v37 = vsub.f32 %v340_v12, %v1136_v29  ;;  %v337_v40 = vand.u32 4294901760, %v336_v33  ;;  %v1153_v43 = vand.u32 4294901760, %v358_v35 }
  0x2d   : > { %235 = vmatpush.msra.mxu0 %v1086_v46  ;;  %302 = vmatpush.msra.mxu1 %v301_v0  ;;  %v354_v45 = vsub.f32 %v352_v30, %v1148_v39 }
  0x2e   : > { %398 = vmatpush.msra.mxu2 %v316_v53  ;;  %450 = vmatpush.msra.mxu3 %v1092_v48  ;;  %v348_v41 = vsub.f32 %v346_v20, %v1142_v34  ;;  %v343_v44 = vand.u32 4294901760, %v342_v37  ;;  %v360_v51 = vsub.f32 %v358_v35, %v1153_v43 }
  0x2f   : > { %237 = vmatpush.msra.mxu0 %v1092_v48  ;;  %308 = vmatpush.msra.mxu1 %v307_v5  ;;  %v355_v52 = vand.u32 4294901760, %v354_v45 }
  0x30   : > { %401 = vmatpush.msra.mxu2 %v322_v56  ;;  %452 = vmatpush.msra.mxu3 %v1094_v49  ;;  %v349_v50 = vand.u32 4294901760, %v348_v41  ;;  %v361_v53 = vand.u32 4294901760, %v360_v51 }
  0x31   : > { %239 = vmatpush.msra.mxu0 %v1094_v49  ;;  %314 = vmatpush.msra.mxu1 %v313_v17 }
  0x32   : > { %404 = vmatpush.msra.mxu2 %v328_v60  ;;  %454 = vmatpush.msra.mxu3 %v1098_v54 }
  0x33   : > { %241 = vmatpush.msra.mxu0 %v1098_v54  ;;  %320 = vmatpush.msra.mxu1 %v319_v24 }
  0x34   : > { %407 = vmatpush.msra.mxu2 %v334_v2  ;;  %456 = vmatpush.msra.mxu3 %v1107_v61 }
  0x35   : > { %243 = vmatpush.msra.mxu0 %v1107_v61  ;;  %326 = vmatpush.msra.mxu1 %v325_v32 }
  0x36   : > { %410 = vmatpush.msra.mxu2 %v340_v12  ;;  %458 = vmatpush.msra.mxu3 %v1115_v4 }
  0x37   : > { %245 = vmatpush.msra.mxu0 %v1115_v4  ;;  %332 = vmatpush.msra.mxu1 %v331_v36 }
  0x38   : > { %413 = vmatpush.msra.mxu2 %v346_v20  ;;  %460 = vmatpush.msra.mxu3 %v1123_v13 }
  0x39   : > { %247 = vmatpush.msra.mxu0 %v1123_v13  ;;  %338 = vmatpush.msra.mxu1 %v337_v40 }
  0x3a   : > { %416 = vmatpush.msra.mxu2 %v352_v30  ;;  %462 = vmatpush.msra.mxu3 %v1131_v23 }
  0x3b   : > { %249 = vmatpush.msra.mxu0 %v1131_v23  ;;  %344 = vmatpush.msra.mxu1 %v343_v44 }
  0x3c   : > { %419 = vmatpush.msra.mxu2 %v358_v35  ;;  %746 = vmatpush.msrb.mxu3 %v1035_v3 }
  0x3d   : > { %350 = vmatpush.msra.mxu1 %v349_v50  ;;  %479 = vmatpush.msrb.mxu0 %v1057_v22 }
  0x3e   : > { %730 = vmatpush.msrb.mxu2 %v1057_v22  ;;  %747 = vmatpush.msrb.mxu3 %v1037_v7 }
  0x3f   : > { %356 = vmatpush.msra.mxu1 %v355_v52  ;;  %483 = vmatpush.msrb.mxu0 %v1062_v26 }
  0x40   : > { %731 = vmatpush.msrb.mxu2 %v1062_v26  ;;  %748 = vmatpush.msrb.mxu3 %v1039_v8 }
  0x41   : > { %362 = vmatpush.msra.mxu1 %v361_v53  ;;  %487 = vmatpush.msrb.mxu0 %v1064_v27 }
  0x42   : > { %732 = vmatpush.msrb.mxu2 %v1064_v27  ;;  %749 = vmatpush.msrb.mxu3 %v1041_v9 }
  0x43   : > { %550 = vmatpush.msrb.mxu1 %v1035_v3  ;;  %491 = vmatpush.msrb.mxu0 %v1066_v28  ;;  %v185_v3 = vlaneseq }
  0x44   : > { %733 = vmatpush.msrb.mxu2 %v1066_v28  ;;  %750 = vmatpush.msrb.mxu3 %v1045_v14 }
  0x45   : > { %552 = vmatpush.msrb.mxu1 %v1037_v7  ;;  %495 = vmatpush.msrb.mxu0 %v1071_v31  ;;  %v186_v7 = vand.u32 127, %v185_v3 }
  0x46   : > { %734 = vmatpush.msrb.mxu2 %v1071_v31  ;;  %751 = vmatpush.msrb.mxu3 %v1048_v15 }
  0x47   : > { %554 = vmatpush.msrb.mxu1 %v1039_v8  ;;  %499 = vmatpush.msrb.mxu0 %v1079_v38 }
  0x48   : > { %735 = vmatpush.msrb.mxu2 %v1079_v38  ;;  %752 = vmatpush.msrb.mxu3 %v1050_v16 }
  0x49   : > { %556 = vmatpush.msrb.mxu1 %v1041_v9  ;;  %503 = vmatpush.msrb.mxu0 %v1082_v42  ;;  %v954_v9 = vmov 1.0  }
  0x4a   : > { %736 = vmatpush.msrb.mxu2 %v1082_v42  ;;  %753 = vmatpush.msrb.mxu3 %v1055_v21 }
  0x4b   : > { %558 = vmatpush.msrb.mxu1 %v1045_v14  ;;  %507 = vmatpush.msrb.mxu0 %v1089_v47  ;;  %v955_v14 = vmov 0.0  }
  0x4c   : > { %737 = vmatpush.msrb.mxu2 %v1089_v47  ;;  %754 = vmatpush.msrb.mxu3 %v1086_v46 }
  0x4d   : > { %560 = vmatpush.msrb.mxu1 %v1048_v15  ;;  %511 = vmatpush.msrb.mxu0 %v1104_v59 }
  0x4e   : > { %738 = vmatpush.msrb.mxu2 %v1104_v59  ;;  %755 = vmatpush.msrb.mxu3 %v1092_v48 }
  0x4f   : > { %562 = vmatpush.msrb.mxu1 %v1050_v16  ;;  %515 = vmatpush.msrb.mxu0 %v1112_v1 }
  0x50   : > { %739 = vmatpush.msrb.mxu2 %v1112_v1  ;;  %756 = vmatpush.msrb.mxu3 %v1094_v49 }
  0x51   : > { %564 = vmatpush.msrb.mxu1 %v1055_v21  ;;  %519 = vmatpush.msrb.mxu0 %v1120_v11 }
  0x52   : > { %740 = vmatpush.msrb.mxu2 %v1120_v11  ;;  %757 = vmatpush.msrb.mxu3 %v1098_v54 }
  0x53   : > { %566 = vmatpush.msrb.mxu1 %v1086_v46  ;;  %523 = vmatpush.msrb.mxu0 %v1128_v19 }
  0x54   : > { %741 = vmatpush.msrb.mxu2 %v1128_v19  ;;  %758 = vmatpush.msrb.mxu3 %v1107_v61 }
  0x55   : > { %568 = vmatpush.msrb.mxu1 %v1092_v48  ;;  %527 = vmatpush.msrb.mxu0 %v1136_v29 }
  0x56   : > { %742 = vmatpush.msrb.mxu2 %v1136_v29  ;;  %759 = vmatpush.msrb.mxu3 %v1115_v4 }
  0x57   : > { %570 = vmatpush.msrb.mxu1 %v1094_v49  ;;  %531 = vmatpush.msrb.mxu0 %v1142_v34 }
  0x58   : > { %743 = vmatpush.msrb.mxu2 %v1142_v34  ;;  %760 = vmatpush.msrb.mxu3 %v1123_v13 }
  0x59   : > { %572 = vmatpush.msrb.mxu1 %v1098_v54  ;;  %535 = vmatpush.msrb.mxu0 %v1148_v39 }
  0x5a   : > { %744 = vmatpush.msrb.mxu2 %v1148_v39  ;;  %761 = vmatpush.msrb.mxu3 %v1131_v23 }
  0x5b   : > { %574 = vmatpush.msrb.mxu1 %v1107_v61  ;;  %539 = vmatpush.msrb.mxu0 %v1153_v43 }
  0x5c   : > { %745 = vmatpush.msrb.mxu2 %v1153_v43 }
  0x5d   : > { %576 = vmatpush.msrb.mxu1 %v1115_v4 }
  0x5f   : > { %578 = vmatpush.msrb.mxu1 %v1123_v13 }
  0x61   : > { %580 = vmatpush.msrb.mxu1 %v1131_v23 }
  0x91   : > { %v192_v8 = vpop.permute.xlu0 %191 }
  0x92   : > { %vm196_vm0 = vcmp.eq.s32.totalorder %v192_v8, %v186_v7 }
  0x93   : > { %718 = vmatmul.msk.f32.vlgmr.msra.gmra.mxu1 %vm196_vm0, %v954_v9  ;;  %v716_v15 = vsel %vm196_vm0, 1.0, %v955_v14 }
  0x94   : > { %v251_v16 = vsub.f32 %v716_v15, %v716_v15 }
  0x96   : > { %422 = vmatmul.f32.vlgmr.msra.gmra.mxu2 %v251_v16  ;;  %v252_v21 = vand.u32 4294901760, %v251_v16 }
  0x98   : > { %466 = vmatmul.f32.vlgmr.msra.gmra.mxu3 %v252_v21  ;;  %v253_v22 = vsub.f32 %v251_v16, %v252_v21 }
  0x99   : > { %v195_v26 = vpop.permute.xlu0 %194 }
  0x9a   : > { %vm197_vm1 = vcmp.eq.s32.totalorder %v195_v26, %v186_v7  ;;  %v254_v27 = vand.u32 4294901760, %v253_v22 }
  0x9b   : > { %719 = vmatmul.msk.f32.gmra.mxu1 %vm197_vm1, %v954_v9  ;;  %v717_v28 = vsel %vm197_vm1, 1.0, %v955_v14 }
  0x9c   : > { %255 = vmatmul.f32.vlgmr.msra.gmra.mxu0 %v254_v27  ;;  %v259_v31 = vsub.f32 %v717_v28, %v717_v28 }
  0x9e   : > { %427 = vmatmul.f32.gmra.mxu2 %v259_v31  ;;  %v260_v38 = vand.u32 4294901760, %v259_v31 }
  0xa0   : > { %472 = vmatmul.f32.gmra.mxu3 %v260_v38  ;;  %v261_v42 = vsub.f32 %v259_v31, %v260_v38 }
  0xa2   : > { %v262_v46 = vand.u32 4294901760, %v261_v42 }
  0xa3   : > { %722 = vmatmul.msk.f32.vlgmr.msrb.gmra.mxu1 %vm196_vm0, %v954_v9 }
  0xa4   : > { %263 = vmatmul.f32.gmra.mxu0 %v262_v46 }
  0xa6   : > { %721 = vmatmul.msk.f32.vlgmr.msrb.gmra.mxu2 %vm197_vm1, %v954_v9 }
  0xa8   : > { %723 = vmatmul.msk.f32.vlgmr.msrb.gmra.mxu3 %vm197_vm1, %v954_v9 }
  0xac   : > { %720 = vmatmul.msk.f32.vlgmr.msrb.gmra.mxu0 %vm196_vm0, %v954_v9 }
 0x110   : > { %v365_v47 = vpop.f32.mrf.mxu1 }
 0x118   : > { %v369_v55 = vpop.f32.mrf.mxu1 }
 0x119   : > { %v256_v48 = vpop.f32.mrf.mxu0  ;;  %v423_v49 = vpop.f32.mrf.mxu2 }
 0x11a   : > { %v366_v56 = vadd.f32 %v365_v47, %v256_v48 }
 0x11b   : > { %v467_v54 = vpop.f32.mrf.mxu3 }
 0x11c   : > { %v424_v61 = vadd.f32 %v423_v49, %v366_v56 }
 0x11e   : > { %v468_v63 = vadd.f32 %v467_v54, %v424_v61 }
 0x120   : > { %v583_v6 = vpop.f32.mrf.mxu1 }
 0x121   : > { %v264_v57 = vpop.f32.mrf.mxu0  ;;  %v428_v58 = vpop.f32.mrf.mxu2 }
 0x122   : > { %v370_v59 = vadd.f32 %v369_v55, %v264_v57 }
 0x123   : > { %v473_v60 = vpop.f32.mrf.mxu3 }
 0x124   : > { %v429_v62 = vadd.f32 %v428_v58, %v370_v59 }
 0x126   : > { %v474_v0 = vadd.f32 %v473_v60, %v429_v62 }
 0x129   : > { %v542_v1 = vpop.f32.mrf.mxu0  ;;  %v546_v2 = vpop.f32.mrf.mxu2 }
 0x12a   : > { %v543_v4 = vadd.f32 %v542_v1, %v468_v63  ;;  %v547_v5 = vadd.f32 %v546_v2, %v474_v0 }
 0x12b   : > { %v587_v10 = vpop.f32.mrf.mxu3 }
 0x12c   : > { %v584_v11 = vadd.f32 %v583_v6, %v543_v4  ;;  %v588_v12 = vadd.f32 %v587_v10, %v547_v5 }
 0x12e   : > { %594 = vst [vmem:[%s174_s23] sm:$0xff] %v584_v11 }
 0x12f   : > { %595 = vst [vmem:[%s174_s23 + $0x8] sm:$0xff] %v588_v12 }
 0x130   : > { %893 = shalt.err (!%p890_p9)
}
 0x131   : > { %s956_s5 = smov 128   ;;  %s957_s6 = smov 8  }
 0x132   : > { %766 = dma.vmem_to_hbm [thread:$0]  (%p1013_p4), %s620_s24, 256, %s622_s25, %s607_s12, %s956_s5, %s956_s5, %s957_s6  }
 0x133 PF: > { %p778_p10 = scmp.ge.s32.totalorder %s948_s14, 2  ;;  %s636_s7 = sand.u32 1, %s928_s9  }
 0x134   : > { %s637_s8 = scalar_lea.sflag [#allocation4], %s636_s7 }
 0x135   : > { %p773_p11 = pnand %p778_p10, %p1020_p8 }
 0x137   : > { %p774_p12 = pneg %p773_p11 }
 0x139   : > { %923 = dma.done.wait (%p774_p12), %s637_s8, 256  }
 0x13a   : > { %925 = vsyncadd (%p774_p12), %s637_s8, 4294967040  ;;  %s16_s14 = sadd.s32 1, %s948_s14   ;;  %s1273_s9 = smov %s932_s10 }
 0x13b   : > { %p13_p13 = scmp.ge.s32.totalorder %s16_s14, 4   ;;  %s1274_s10 = smov %s936_s11 }
 0x13c   : > { %s1275_s11 = smov %s1026_s22  ;;  %s1276_s12 = smov %s944_s13 }
 0x13d   : > { %s1277_s13 = smov %s1279_s17  ;;  %15 = sbr.rel (!%p13_p13) target bundleno = 5 (0x5), region = 77 }
 0x142   :  { %643 = vsyncpa [#allocation3], 1 }
 0x143   :  { %645 = vsyncpa [#allocation3 + $0x1], 1 }
 0x144   :  { %646 = vsyncpa [#allocation4], 1 }
 0x145   :  { %648 = vsyncpa [#allocation4 + $0x1], 1 }

</bundles_post_ra>
